<compile_context>
chip_gen: v7x
topology: tpu7x:2x2x1
jax: 0.10.0
libtpu: 0.0.40
codegen_flags: <defaults>
</compile_context>

<pallas_src>
import functools

import jax
import jax.numpy as jnp
from jax.experimental import pallas as pl
from jax.experimental.pallas import tpu as pltpu

LANE = 128
SUBLANE = 8


def _round_up(n, m):
    return (n + m - 1) // m * m


# ----------------------------- Fused kernel --------------------------------

def _make_fused_kernel(n_weights, batch_p):
    """Builds a kernel running every layer of the net in one invocation."""

    def kernel(*refs):
        it = iter(refs)
        time_ref = next(it)                              # (1,)  f32 in SMEM
        x_ref = next(it)                                 # (Bp, D0p)  VMEM
        w_refs = [next(it) for _ in range(n_weights)]    # (Dinp, Doutp)
        k_refs = [next(it) for _ in range(n_weights)]    # (1, Doutp) layer keys
        b_refs = [next(it) for _ in range(n_weights)]    # (1, Doutp) biases
        ra_ref = next(it)                                # (Bp, Dlastp)
        rb_ref = next(it)                                # (Bp, Dlastp)
        pre_refs = [next(it) for _ in range(n_weights)]  # (Bp, Doutp[i])

        t = time_ref[0]                                  # scalar time (SMEM)

        a = x_ref[...]
        b = None                                         # layer 0: r_b == 0 exactly
        for i in range(n_weights):
            if i > 0:
                # activation(mag + bias) gating before every layer but the 1st
                mag = jnp.sqrt(a * a + b * b)
                out_mag = jnp.maximum(mag + b_refs[i - 1][...], 0.0)
                scale = out_mag * pl.reciprocal(mag + 1e-5, approx=False)
                a = a * scale
                b = b * scale

            # phase hash: linear map then rotation by phi = time * layer_key
            phi = t * k_refs[i][...]                     # (1, Doutp); cos/sin on EUP
            c = jnp.cos(phi)
            s = jnp.sin(phi)
            w = w_refs[i][...]
            if b is None:
                # r_b == 0: one matmul, rotation collapses to (z*c, z*s)
                z = jnp.dot(a, w, preferred_element_type=jnp.float32)
                a = z * c
                b = z * s
            else:
                # stack a/b along sublanes -> one MXU pass per layer
                z = jnp.dot(jnp.concatenate([a, b], axis=0), w,
                            preferred_element_type=jnp.float32)
                za = z[:batch_p, :]
                zb = z[batch_p:, :]
                a = za * c - zb * s
                b = za * s + zb * c
            pre_refs[i][...] = a                         # lane-dense store

        # final gate: no nonlinearity (out_mag = mag + bias)
        mag = jnp.sqrt(a * a + b * b)
        out_mag = mag + b_refs[n_weights - 1][...]
        scale = out_mag * pl.reciprocal(mag + 1e-5, approx=False)
        ra_ref[...] = a * scale
        rb_ref[...] = b * scale

    return kernel


# ------------------------------- Wrapper ------------------------------------

@jax.jit
def local_phase_hash_net_forward(x, time, weights, layer_keys, biases):
    """Mirrors LocalPhaseHashNet.forward(x, time) with one fused pallas_call."""
    n_w = len(weights)
    B = x.shape[0]
    Bp = _round_up(B, SUBLANE)
    x_flat = x.reshape(B, -1).astype(jnp.float32)

    d_in = [w.shape[0] for w in weights]
    d_out = [w.shape[1] for w in weights]
    d_in_p = [_round_up(d, LANE) for d in d_in]
    d_out_p = [_round_up(d, LANE) for d in d_out]

    # Lane-dense zero padding: feature axes -> multiples of 128 lanes, batch
    # axis -> multiple of 8 sublanes (padded rows just compute garbage that is
    # sliced away; they never affect real rows since the matmul is row-wise).
    x_pad = jnp.pad(x_flat, ((0, Bp - B), (0, d_in_p[0] - d_in[0])))
    w_pad = [jnp.pad(w.astype(jnp.float32),
                     ((0, d_in_p[i] - d_in[i]), (0, d_out_p[i] - d_out[i])))
             for i, w in enumerate(weights)]
    k_pad = [jnp.pad(k.astype(jnp.float32).reshape(1, -1),
                     ((0, 0), (0, d_out_p[i] - d_out[i])))
             for i, k in enumerate(layer_keys)]
    b_pad = [jnp.pad(b.astype(jnp.float32).reshape(1, -1),
                     ((0, 0), (0, d_out_p[i] - d_out[i])))
             for i, b in enumerate(biases)]
    time_arr = jnp.asarray(time, dtype=jnp.float32).reshape(1)

    vmem = pl.BlockSpec(memory_space=pltpu.MemorySpace.VMEM)
    smem = pl.BlockSpec(memory_space=pltpu.MemorySpace.SMEM)

    in_specs = [smem, vmem] + [vmem] * (3 * n_w)
    out_shape = tuple(
        [jax.ShapeDtypeStruct((Bp, d_out_p[-1]), jnp.float32)] * 2
        + [jax.ShapeDtypeStruct((Bp, d_out_p[i]), jnp.float32)
           for i in range(n_w)])
    out_specs = tuple([vmem] * (2 + n_w))

    outs = pl.pallas_call(
        _make_fused_kernel(n_w, Bp),
        out_shape=out_shape,
        in_specs=in_specs,
        out_specs=out_specs,
    )(time_arr, x_pad, *w_pad, *k_pad, *b_pad)

    ra_p, rb_p = outs[0], outs[1]
    pre_p = outs[2:]
    r_a = ra_p[:B, :d_out[-1]]
    r_b = rb_p[:B, :d_out[-1]]
    preactivations = [pre_p[i][:B, :d_out[i]] for i in range(n_w)]
    return r_a, r_b, preactivations


# --------------------------- Pure-JAX reference -----------------------------

def reference_forward(x, time, weights, layer_keys, biases):
    B = x.shape[0]
    r_a = x.reshape(B, -1).astype(jnp.float32)
    r_b = jnp.zeros_like(r_a)
    preacts = []
    for i in range(len(weights)):
        if i > 0:
            mag = jnp.sqrt(r_a * r_a + r_b * r_b)
            out_mag = jnp.maximum(mag + biases[i - 1][None, :], 0.0)
            scale = out_mag / (mag + 1e-5)
            r_a = r_a * scale
            r_b = r_b * scale
        phi = time * layer_keys[i]
        c, s = jnp.cos(phi)[None, :], jnp.sin(phi)[None, :]
        za, zb = r_a @ weights[i], r_b @ weights[i]
        r_a, r_b = za * c - zb * s, za * s + zb * c
        preacts.append(r_a)
    mag = jnp.sqrt(r_a * r_a + r_b * r_b)
    out_mag = mag + biases[-1][None, :]
    scale = out_mag / (mag + 1e-5)
    return r_a * scale, r_b * scale, preacts


# --------------------------------- Main -------------------------------------

if __name__ == "__main__":
    # Module config (small): input_dim=(4, 16) -> 64 flat, n_units=32,
    # n_layers=2 hidden hash layers, final output dim = 10.
    input_dim = (4, 16)
    n_units = 32
    n_layers = 2
    batch = 8
    time = jnp.float32(0.7)

    layer_units = [int(jnp.prod(jnp.array(input_dim)))]
    layer_units += [n_units for _ in range(n_layers)]
    layer_units += [10]

    key = jax.random.PRNGKey(0)
    k_x, k_w, k_phase = jax.random.split(key, 3)

    x = jax.random.normal(k_x, (batch,) + input_dim, dtype=jnp.float32)

    weights, layer_keys, biases = [], [], []
    wkeys = jax.random.split(k_w, len(layer_units) - 1)
    pkeys = jax.random.split(k_phase, len(layer_units) - 1)
    for i in range(len(layer_units) - 1):
        din, dout = layer_units[i], layer_units[i + 1]
        weights.append(
            jax.random.normal(wkeys[i], (din, dout), dtype=jnp.float32)
            / jnp.sqrt(jnp.float32(din)))
        layer_keys.append(
            jax.random.uniform(pkeys[i], (dout,), dtype=jnp.float32,
                               minval=0.0, maxval=2.0 * jnp.pi))
        biases.append(jnp.zeros((dout,), dtype=jnp.float32))  # nn.Parameter(zeros)

    r_a, r_b, preacts = local_phase_hash_net_forward(
        x, time, weights, layer_keys, biases)
    jax.block_until_ready((r_a, r_b, preacts))

    ra_ref, rb_ref, pre_ref = reference_forward(
        x, time, weights, layer_keys, biases)

    assert jnp.allclose(r_a, ra_ref, atol=2e-4, rtol=2e-4)
    assert jnp.allclose(r_b, rb_ref, atol=2e-4, rtol=2e-4)
    for p, pr in zip(preacts, pre_ref):
        assert jnp.allclose(p, pr, atol=2e-4, rtol=2e-4)

    print("KERNEL_OK")
</pallas_src>

<mosaic_0001>
module attributes {stable_mosaic.version = 11 : i64} {
  func.func @kernel(%arg0: memref<1xf32, #tpu.memory_space<smem>>, %arg1: memref<8x128xf32, #tpu.memory_space<vmem>>, %arg2: memref<128x128xf32, #tpu.memory_space<vmem>>, %arg3: memref<128x128xf32, #tpu.memory_space<vmem>>, %arg4: memref<128x128xf32, #tpu.memory_space<vmem>>, %arg5: memref<1x128xf32, #tpu.memory_space<vmem>>, %arg6: memref<1x128xf32, #tpu.memory_space<vmem>>, %arg7: memref<1x128xf32, #tpu.memory_space<vmem>>, %arg8: memref<1x128xf32, #tpu.memory_space<vmem>>, %arg9: memref<1x128xf32, #tpu.memory_space<vmem>>, %arg10: memref<1x128xf32, #tpu.memory_space<vmem>>, %arg11: memref<8x128xf32, #tpu.memory_space<vmem>>, %arg12: memref<8x128xf32, #tpu.memory_space<vmem>>, %arg13: memref<8x128xf32, #tpu.memory_space<vmem>>, %arg14: memref<8x128xf32, #tpu.memory_space<vmem>>, %arg15: memref<8x128xf32, #tpu.memory_space<vmem>>) attributes {dimension_semantics = [], scalar_prefetch = 0 : i64, scratch_operands = 0 : i64, tpu.core_type = #tpu.core_type<tc>} {
    %c0 = arith.constant 0 : index
    %0 = memref.load %arg0[%c0] : memref<1xf32, #tpu.memory_space<smem>>
    %c0_0 = arith.constant 0 : index
    %c0_1 = arith.constant 0 : index
    %1 = vector.load %arg1[%c0_0, %c0_1] : memref<8x128xf32, #tpu.memory_space<vmem>>, vector<8x128xf32>
    %c0_2 = arith.constant 0 : index
    %c0_3 = arith.constant 0 : index
    %2 = vector.load %arg5[%c0_2, %c0_3] : memref<1x128xf32, #tpu.memory_space<vmem>>, vector<1x128xf32>
    %3 = vector.broadcast %0 : f32 to vector<1x128xf32>
    %4 = arith.mulf %3, %2 : vector<1x128xf32>
    %5 = math.cos %4 : vector<1x128xf32>
    %6 = math.sin %4 : vector<1x128xf32>
    %c0_4 = arith.constant 0 : index
    %c0_5 = arith.constant 0 : index
    %7 = vector.load %arg2[%c0_4, %c0_5] : memref<128x128xf32, #tpu.memory_space<vmem>>, vector<128x128xf32>
    %cst = arith.constant dense<0.000000e+00> : vector<8x128xf32>
    %8 = tpu.matmul %1, %7, %cst {dimension_numbers = #tpu.dot_dimension_numbers<[1], [0], [0], [1], [0, 0, 1, 1], [], []>} : vector<8x128xf32>, vector<128x128xf32>, vector<8x128xf32> -> vector<8x128xf32>
    %9 = vector.broadcast %5 : vector<1x128xf32> to vector<8x128xf32>
    %10 = arith.mulf %8, %9 : vector<8x128xf32>
    %11 = vector.broadcast %6 : vector<1x128xf32> to vector<8x128xf32>
    %12 = arith.mulf %8, %11 : vector<8x128xf32>
    %c0_6 = arith.constant 0 : index
    %c0_7 = arith.constant 0 : index
    %13 = vector.load %arg13[%c0_6, %c0_7] : memref<8x128xf32, #tpu.memory_space<vmem>>, vector<8x128xf32>
    tpu.vector_store %arg13[%c0_6, %c0_7], %10 {strides = array<i32>} : memref<8x128xf32, #tpu.memory_space<vmem>>, vector<8x128xf32>,
    %14 = arith.mulf %10, %10 : vector<8x128xf32>
    %15 = arith.mulf %12, %12 : vector<8x128xf32>
    %16 = arith.addf %14, %15 : vector<8x128xf32>
    %17 = math.sqrt %16 : vector<8x128xf32>
    %c0_8 = arith.constant 0 : index
    %c0_9 = arith.constant 0 : index
    %18 = vector.load %arg8[%c0_8, %c0_9] : memref<1x128xf32, #tpu.memory_space<vmem>>, vector<1x128xf32>
    %19 = vector.broadcast %18 : vector<1x128xf32> to vector<8x128xf32>
    %20 = arith.addf %17, %19 : vector<8x128xf32>
    %cst_10 = arith.constant 0.000000e+00 : f32
    %21 = vector.broadcast %cst_10 : f32 to vector<8x128xf32>
    %22 = arith.maximumf %20, %21 : vector<8x128xf32>
    %cst_11 = arith.constant 9.99999974E-6 : f32
    %23 = vector.broadcast %cst_11 : f32 to vector<8x128xf32>
    %24 = arith.addf %17, %23 : vector<8x128xf32>
    %25 = tpu.reciprocal %24 : vector<8x128xf32> -> vector<8x128xf32>
    %26 = arith.mulf %22, %25 : vector<8x128xf32>
    %27 = arith.mulf %10, %26 : vector<8x128xf32>
    %28 = arith.mulf %12, %26 : vector<8x128xf32>
    %c0_12 = arith.constant 0 : index
    %c0_13 = arith.constant 0 : index
    %29 = vector.load %arg6[%c0_12, %c0_13] : memref<1x128xf32, #tpu.memory_space<vmem>>, vector<1x128xf32>
    %30 = vector.broadcast %0 : f32 to vector<1x128xf32>
    %31 = arith.mulf %30, %29 : vector<1x128xf32>
    %32 = math.cos %31 : vector<1x128xf32>
    %33 = math.sin %31 : vector<1x128xf32>
    %c0_14 = arith.constant 0 : index
    %c0_15 = arith.constant 0 : index
    %34 = vector.load %arg3[%c0_14, %c0_15] : memref<128x128xf32, #tpu.memory_space<vmem>>, vector<128x128xf32>
    %35 = tpu.concatenate %27, %28 in 0 : vector<8x128xf32>, vector<8x128xf32> -> vector<16x128xf32>
    %cst_16 = arith.constant dense<0.000000e+00> : vector<16x128xf32>
    %36 = tpu.matmul %35, %34, %cst_16 {dimension_numbers = #tpu.dot_dimension_numbers<[1], [0], [0], [1], [0, 0, 1, 1], [], []>} : vector<16x128xf32>, vector<128x128xf32>, vector<16x128xf32> -> vector<16x128xf32>
    %37 = vector.extract_strided_slice %36 {offsets = [0, 0], sizes = [8, 128], strides = [1, 1]} : vector<16x128xf32> to vector<8x128xf32>
    %38 = vector.extract_strided_slice %36 {offsets = [8, 0], sizes = [8, 128], strides = [1, 1]} : vector<16x128xf32> to vector<8x128xf32>
    %39 = vector.broadcast %32 : vector<1x128xf32> to vector<8x128xf32>
    %40 = arith.mulf %37, %39 : vector<8x128xf32>
    %41 = vector.broadcast %33 : vector<1x128xf32> to vector<8x128xf32>
    %42 = arith.mulf %38, %41 : vector<8x128xf32>
    %43 = arith.subf %40, %42 : vector<8x128xf32>
    %44 = vector.broadcast %33 : vector<1x128xf32> to vector<8x128xf32>
    %45 = arith.mulf %37, %44 : vector<8x128xf32>
    %46 = vector.broadcast %32 : vector<1x128xf32> to vector<8x128xf32>
    %47 = arith.mulf %38, %46 : vector<8x128xf32>
    %48 = arith.addf %45, %47 : vector<8x128xf32>
    %c0_17 = arith.constant 0 : index
    %c0_18 = arith.constant 0 : index
    %49 = vector.load %arg14[%c0_17, %c0_18] : memref<8x128xf32, #tpu.memory_space<vmem>>, vector<8x128xf32>
    tpu.vector_store %arg14[%c0_17, %c0_18], %43 {strides = array<i32>} : memref<8x128xf32, #tpu.memory_space<vmem>>, vector<8x128xf32>,
    %50 = arith.mulf %43, %43 : vector<8x128xf32>
    %51 = arith.mulf %48, %48 : vector<8x128xf32>
    %52 = arith.addf %50, %51 : vector<8x128xf32>
    %53 = math.sqrt %52 : vector<8x128xf32>
    %c0_19 = arith.constant 0 : index
    %c0_20 = arith.constant 0 : index
    %54 = vector.load %arg9[%c0_19, %c0_20] : memref<1x128xf32, #tpu.memory_space<vmem>>, vector<1x128xf32>
    %55 = vector.broadcast %54 : vector<1x128xf32> to vector<8x128xf32>
    %56 = arith.addf %53, %55 : vector<8x128xf32>
    %cst_21 = arith.constant 0.000000e+00 : f32
    %57 = vector.broadcast %cst_21 : f32 to vector<8x128xf32>
    %58 = arith.maximumf %56, %57 : vector<8x128xf32>
    %cst_22 = arith.constant 9.99999974E-6 : f32
    %59 = vector.broadcast %cst_22 : f32 to vector<8x128xf32>
    %60 = arith.addf %53, %59 : vector<8x128xf32>
    %61 = tpu.reciprocal %60 : vector<8x128xf32> -> vector<8x128xf32>
    %62 = arith.mulf %58, %61 : vector<8x128xf32>
    %63 = arith.mulf %43, %62 : vector<8x128xf32>
    %64 = arith.mulf %48, %62 : vector<8x128xf32>
    %c0_23 = arith.constant 0 : index
    %c0_24 = arith.constant 0 : index
    %65 = vector.load %arg7[%c0_23, %c0_24] : memref<1x128xf32, #tpu.memory_space<vmem>>, vector<1x128xf32>
    %66 = vector.broadcast %0 : f32 to vector<1x128xf32>
    %67 = arith.mulf %66, %65 : vector<1x128xf32>
    %68 = math.cos %67 : vector<1x128xf32>
    %69 = math.sin %67 : vector<1x128xf32>
    %c0_25 = arith.constant 0 : index
    %c0_26 = arith.constant 0 : index
    %70 = vector.load %arg4[%c0_25, %c0_26] : memref<128x128xf32, #tpu.memory_space<vmem>>, vector<128x128xf32>
    %71 = tpu.concatenate %63, %64 in 0 : vector<8x128xf32>, vector<8x128xf32> -> vector<16x128xf32>
    %cst_27 = arith.constant dense<0.000000e+00> : vector<16x128xf32>
    %72 = tpu.matmul %71, %70, %cst_27 {dimension_numbers = #tpu.dot_dimension_numbers<[1], [0], [0], [1], [0, 0, 1, 1], [], []>} : vector<16x128xf32>, vector<128x128xf32>, vector<16x128xf32> -> vector<16x128xf32>
    %73 = vector.extract_strided_slice %72 {offsets = [0, 0], sizes = [8, 128], strides = [1, 1]} : vector<16x128xf32> to vector<8x128xf32>
    %74 = vector.extract_strided_slice %72 {offsets = [8, 0], sizes = [8, 128], strides = [1, 1]} : vector<16x128xf32> to vector<8x128xf32>
    %75 = vector.broadcast %68 : vector<1x128xf32> to vector<8x128xf32>
    %76 = arith.mulf %73, %75 : vector<8x128xf32>
    %77 = vector.broadcast %69 : vector<1x128xf32> to vector<8x128xf32>
    %78 = arith.mulf %74, %77 : vector<8x128xf32>
    %79 = arith.subf %76, %78 : vector<8x128xf32>
    %80 = vector.broadcast %69 : vector<1x128xf32> to vector<8x128xf32>
    %81 = arith.mulf %73, %80 : vector<8x128xf32>
    %82 = vector.broadcast %68 : vector<1x128xf32> to vector<8x128xf32>
    %83 = arith.mulf %74, %82 : vector<8x128xf32>
    %84 = arith.addf %81, %83 : vector<8x128xf32>
    %c0_28 = arith.constant 0 : index
    %c0_29 = arith.constant 0 : index
    %85 = vector.load %arg15[%c0_28, %c0_29] : memref<8x128xf32, #tpu.memory_space<vmem>>, vector<8x128xf32>
    tpu.vector_store %arg15[%c0_28, %c0_29], %79 {strides = array<i32>} : memref<8x128xf32, #tpu.memory_space<vmem>>, vector<8x128xf32>,
    %86 = arith.mulf %79, %79 : vector<8x128xf32>
    %87 = arith.mulf %84, %84 : vector<8x128xf32>
    %88 = arith.addf %86, %87 : vector<8x128xf32>
    %89 = math.sqrt %88 : vector<8x128xf32>
    %c0_30 = arith.constant 0 : index
    %c0_31 = arith.constant 0 : index
    %90 = vector.load %arg10[%c0_30, %c0_31] : memref<1x128xf32, #tpu.memory_space<vmem>>, vector<1x128xf32>
    %91 = vector.broadcast %90 : vector<1x128xf32> to vector<8x128xf32>
    %92 = arith.addf %89, %91 : vector<8x128xf32>
    %cst_32 = arith.constant 9.99999974E-6 : f32
    %93 = vector.broadcast %cst_32 : f32 to vector<8x128xf32>
    %94 = arith.addf %89, %93 : vector<8x128xf32>
    %95 = tpu.reciprocal %94 : vector<8x128xf32> -> vector<8x128xf32>
    %96 = arith.mulf %92, %95 : vector<8x128xf32>
    %97 = arith.mulf %79, %96 : vector<8x128xf32>
    %c0_33 = arith.constant 0 : index
    %c0_34 = arith.constant 0 : index
    %98 = vector.load %arg11[%c0_33, %c0_34] : memref<8x128xf32, #tpu.memory_space<vmem>>, vector<8x128xf32>
    tpu.vector_store %arg11[%c0_33, %c0_34], %97 {strides = array<i32>} : memref<8x128xf32, #tpu.memory_space<vmem>>, vector<8x128xf32>,
    %99 = arith.mulf %84, %96 : vector<8x128xf32>
    %c0_35 = arith.constant 0 : index
    %c0_36 = arith.constant 0 : index
    %100 = vector.load %arg12[%c0_35, %c0_36] : memref<8x128xf32, #tpu.memory_space<vmem>>, vector<8x128xf32>
    tpu.vector_store %arg12[%c0_35, %c0_36], %99 {strides = array<i32>} : memref<8x128xf32, #tpu.memory_space<vmem>>, vector<8x128xf32>,
    return
  }
}

</mosaic_0001>

<bundles_post_ra>
// kernel: local_phase_hash_net_forward.1
= control target key start
LH: loop header
LB: loop body
LE: loop exit
PB: predicated region body
PF: predicated region fallthrough
CT: control target
= control target key end

     0   :  { %22 = vsyncpa [#allocation4], 0  ;;  %s2062_s0 = inlined_call_operand.<no memory space> [shape: f32[1], index: 0, kind: input, shape index: {}]   ;;  %s2063_s1 = inlined_call_operand.vmem [shape: f32[8,128], index: 1, kind: input, shape index: {}]   ;;  %s2064_s2 = inlined_call_operand.vmem [shape: f32[128,128], index: 2, kind: input, shape index: {}]   ;;  %s2065_s3 = inlined_call_operand.vmem [shape: f32[128,128], index: 3, kind: input, shape index: {}]   ;;  %s2066_s4 = inlined_call_operand.vmem [shape: f32[128,128], index: 4, kind: input, shape index: {}]   ;;  %s2067_s5 = inlined_call_operand.vmem [shape: f32[1,128], index: 5, kind: input, shape index: {}]   ;;  %s2068_s6 = inlined_call_operand.vmem [shape: f32[1,128], index: 6, kind: input, shape index: {}]   ;;  %s2069_s7 = inlined_call_operand.vmem [shape: f32[1,128], index: 7, kind: input, shape index: {}]   ;;  %s2070_s8 = inlined_call_operand.vmem [shape: f32[1,128], index: 8, kind: input, shape index: {}]   ;;  %s2071_s9 = inlined_call_operand.vmem [shape: f32[1,128], index: 9, kind: input, shape index: {}]   ;;  %s2072_s10 = inlined_call_operand.vmem [shape: f32[1,128], index: 10, kind: input, shape index: {}]   ;;  %s2073_s11 = inlined_call_operand.hbm [shape: f32[8,128], index: 11, kind: output, shape index: {0}]   ;;  %s2074_s12 = inlined_call_operand.hbm [shape: f32[8,128], index: 12, kind: output, shape index: {1}]   ;;  %s2075_s13 = inlined_call_operand.hbm [shape: f32[8,128], index: 13, kind: output, shape index: {2}]   ;;  %s2076_s14 = inlined_call_operand.hbm [shape: f32[8,128], index: 14, kind: output, shape index: {3}]   ;;  %s2077_s15 = inlined_call_operand.hbm [shape: f32[8,128], index: 15, kind: output, shape index: {4}]  }
   0x1   :  { %23 = vsyncpa [#allocation6], 0  ;;  %v259_v0 = vld [vmem:[%s2064_s2] sm:$0xff]  ;;  %v260_v1 = vld [vmem:[%s2064_s2 + $0x8] sm:$0xff]  ;;  %v1578_v3 = vmov 0.0|0.0   ;;  %vm1579_vm0 = vmmov 0  }
   0x2   :  { %v261_v2 = vld [vmem:[%s2064_s2 + $0x10] sm:$0xff]  ;;  %1324 = vmatprep.subr.bf16.mxu0 %v1578_v3  ;;  %v1325_v4 = vpack.c.bf16 %v260_v1, %v259_v0  ;;  %v262_v5 = vld [vmem:[%s2064_s2 + $0x18] sm:$0xff]  ;;  %v1580_v6 = vmov 0.0   ;;  %v263_v8 = vld [vmem:[%s2064_s2 + $0x20] sm:$0xff] }
   0x3   :  { %1251 = vmatprep.mubr.msk.f32.mxu0 %vm1579_vm0, %v1580_v6  ;;  %v1328_v7 = vpack.c.bf16 %v262_v5, %v261_v2  ;;  %v264_v9 = vld [vmem:[%s2064_s2 + $0x28] sm:$0xff] }
   0x4   :  { %1326 = vmatpush3.bf16.msra.mxu0 %v1325_v4 }
   0x5   :  { %1327 = vmatprep.subr.bf16.mxu0 %v1578_v3 }
   0x6   :  { %24 = vsyncpa [#allocation9], 0  ;;  %v1331_v10 = vpack.c.bf16 %v264_v9, %v263_v8  ;;  %v265_v11 = vld [vmem:[%s2064_s2 + $0x30] sm:$0xff]  ;;  %v266_v12 = vld [vmem:[%s2064_s2 + $0x38] sm:$0xff]  ;;  %v1729_v28 = vstv %s2062_s0  ;;  %v1581_v37 = vmov 2102212464  }
   0x7   :  { %v1334_v13 = vpack.c.bf16 %v266_v12, %v265_v11  ;;  %v267_v14 = vld [vmem:[%s2064_s2 + $0x40] sm:$0xff]  ;;  %v268_v15 = vld [vmem:[%s2064_s2 + $0x48] sm:$0xff]  ;;  %v269_v17 = vld [vmem:[%s2064_s2 + $0x50] sm:$0xff]  ;;  %v1582_v39 = vmov 920167782  }
   0x8   :  { %1329 = vmatpush3.bf16.msra.mxu0 %v1328_v7  ;;  %v1337_v16 = vpack.c.bf16 %v268_v15, %v267_v14  ;;  %v270_v18 = vld [vmem:[%s2064_s2 + $0x58] sm:$0xff]  ;;  %v271_v20 = vld [vmem:[%s2064_s2 + $0x60] sm:$0xff]  ;;  %v272_v21 = vld [vmem:[%s2064_s2 + $0x68] sm:$0xff]  ;;  %v1583_v44 = vmov 1326507024  }
   0x9   :  { %1330 = vmatprep.subr.bf16.mxu0 %v1578_v3  ;;  %v1340_v19 = vpack.c.bf16 %v270_v18, %v269_v17  ;;  %v1343_v22 = vpack.c.bf16 %v272_v21, %v271_v20  ;;  %v273_v23 = vld [vmem:[%s2064_s2 + $0x70] sm:$0xff]  ;;  %v274_v24 = vld [vmem:[%s2064_s2 + $0x78] sm:$0xff]  ;;  %v48_v26 = vld [vmem:[%s2063_s1] sm:$0xff]  ;;  %v1584_v46 = vmov 683565275  }
   0xa   :  { %v1346_v25 = vpack.c.bf16 %v274_v24, %v273_v23  ;;  %v49_v27 = vld [vmem:[%s2067_s5] sm:$0x1]  ;;  %v1585_v48 = vmov 2475754826   ;;  %v1586_v51 = vmov 2131351028  }
   0xb   :  { %v1732_v29 = vmul.f32 %v1729_v28, %v49_v27  ;;  %v593_v7 = vld [vmem:[%s2065_s3] sm:$0xff]  ;;  %v594_v8 = vld [vmem:[%s2065_s3 + $0x8] sm:$0xff]  ;;  %v595_v9 = vld [vmem:[%s2065_s3 + $0x10] sm:$0xff] }
   0xc   :  { %1332 = vmatpush3.bf16.msra.mxu0 %v1331_v10  ;;  %v1348_v10 = vpack.c.bf16 %v594_v8, %v593_v7  ;;  %v596_v11 = vld [vmem:[%s2065_s3 + $0x18] sm:$0xff]  ;;  %v597_v15 = vld [vmem:[%s2065_s3 + $0x20] sm:$0xff] }
   0xd   :  { %1333 = vmatprep.subr.bf16.mxu0 %v1578_v3  ;;  %v55_v30 = vand.u32 2139095040, %v1732_v29  ;;  %v52_v41 = vand.u32 2147483647, %v1732_v29  ;;  %v1352_v14 = vpack.c.bf16 %v596_v11, %v595_v9  ;;  %v600_v23 = vld [vmem:[%s2065_s3 + $0x38] sm:$0xff]  ;;  %vm54_vm8 = vcmp.lt.s32.totalorder %v1732_v29, 0 }
   0xe   :  { %1349 = vmatprep.subr.bf16.mxu1 %v1348_v10  ;;  %vm144_vm0 = vweird.f32 %v1732_v29 }
   0xf   :  { %v56_v31 = vshrl.u32 %v55_v30, 23  ;;  %v59_v56 = vand.u32 8388607, %v52_v41  ;;  %1351 = vmatpush3.bf16.msra.mxu1 %v1348_v10  ;;  %vm53_vm9 = vcmp.le.f32.partialorder %v52_v41, 0.7853982  ;;  %v346_v41 = vlaneseq }
  0x10   :  { %1335 = vmatpush3.bf16.msra.mxu0 %v1334_v13  ;;  %1353 = vmatprep.subr.bf16.mxu1 %v1352_v14 }
  0x11   :  { %1336 = vmatprep.subr.bf16.mxu0 %v1578_v3  ;;  %v1139_v32 = vadd.s32 4294967169, %v56_v31  ;;  %v60_v62 = vor.u32 8388608, %v59_v56  ;;  %v601_v31 = vld [vmem:[%s2065_s3 + $0x40] sm:$0xff] }
  0x13   :  { %v62_v33 = vadd.s32 1, %v1139_v32  ;;  %v100_v4 = vshll.u32 %v60_v62, 8  ;;  %1355 = vmatpush3.bf16.msra.mxu1 %v1352_v14  ;;  %v602_v32 = vld [vmem:[%s2065_s3 + $0x48] sm:$0xff] }
  0x14   :  { %1338 = vmatpush3.bf16.msra.mxu0 %v1337_v16  ;;  %v598_v16 = vld [vmem:[%s2065_s3 + $0x28] sm:$0xff] }
  0x15   :  { %1339 = vmatprep.subr.bf16.mxu0 %v1578_v3  ;;  %vm63_vm1 = vcmp.gt.s32.totalorder %v62_v33, 0  ;;  %v1356_v21 = vpack.c.bf16 %v598_v16, %v597_v15 }
  0x16   :  { %v64_v34 = vsel %vm63_vm1, %v62_v33, 0 }
  0x17   :  { %v66_v35 = vand.u32 31, %v64_v34  ;;  %v65_v42 = vshrl.u32 %v64_v34, 5  ;;  %1357 = vmatprep.subr.bf16.mxu1 %v1356_v21  ;;  %v1364_v34 = vpack.c.bf16 %v602_v32, %v601_v31 }
  0x18   :  { %1341 = vmatpush3.bf16.msra.mxu0 %v1340_v19  ;;  %1359 = vmatpush3.bf16.msra.mxu1 %v1356_v21 }
  0x19   :  { %1342 = vmatprep.subr.bf16.mxu0 %v1578_v3  ;;  %v67_v36 = vsub.s32 32, %v66_v35  ;;  %v78_v38 = vshll.u32 %v1581_v37, %v66_v35  ;;  %v81_v43 = vshll.u32 %v1582_v39, %v66_v35  ;;  %v69_v47 = vshll.u32 %v1584_v46, %v66_v35 }
  0x1a   :  { %v72_v49 = vshll.u32 %v1585_v48, %v66_v35  ;;  %v75_v53 = vshll.u32 %v1586_v51, %v66_v35  ;;  %vm87_vm2 = vcmp.lt.s32.totalorder %v65_v42, 4  ;;  %vm84_vm3 = vcmp.lt.s32.totalorder %v65_v42, 1 }
  0x1b   :  { %v79_v40 = vshrl.u32 %v1582_v39, %v67_v36  ;;  %v82_v45 = vshrl.u32 %v1583_v44, %v67_v36  ;;  %v70_v50 = vshrl.u32 %v1585_v48, %v67_v36  ;;  %v73_v52 = vshrl.u32 %v1586_v51, %v67_v36 }
  0x1c   :  { %1344 = vmatpush3.bf16.msra.mxu0 %v1343_v22  ;;  %v76_v54 = vshrl.u32 %v1581_v37, %v67_v36  ;;  %vm86_vm4 = vcmp.lt.s32.totalorder %v65_v42, 3  ;;  %vm85_vm5 = vcmp.lt.s32.totalorder %v65_v42, 2  ;;  %v68_v17 = vshrl.u32 %v1584_v46, %v67_v36  ;;  %v599_v22 = vld [vmem:[%s2065_s3 + $0x30] sm:$0xff] }
  0x1d   :  { %1345 = vmatprep.subr.bf16.mxu0 %v1578_v3  ;;  %v80_v55 = vor.u32 %v79_v40, %v78_v38  ;;  %v83_v57 = vor.u32 %v82_v45, %v81_v43  ;;  %v71_v58 = vor.u32 %v70_v50, %v69_v47  ;;  %v74_v59 = vor.u32 %v73_v52, %v72_v49  ;;  %v603_v36 = vld [vmem:[%s2065_s3 + $0x50] sm:$0xff]  ;;  %v604_v38 = vld [vmem:[%s2065_s3 + $0x58] sm:$0xff]  ;;  %v605_v43 = vld [vmem:[%s2065_s3 + $0x60] sm:$0xff] }
  0x1e   :  { %v77_v60 = vor.u32 %v76_v54, %v75_v53  ;;  %v1368_v42 = vpack.c.bf16 %v604_v38, %v603_v36  ;;  %v606_v45 = vld [vmem:[%s2065_s3 + $0x68] sm:$0xff]  ;;  %v607_v50 = vld [vmem:[%s2065_s3 + $0x70] sm:$0xff]  ;;  %v608_v52 = vld [vmem:[%s2065_s3 + $0x78] sm:$0xff] }
  0x1f   :  { %v93_v61 = vsel %vm87_vm2, %v80_v55, 920167782  ;;  %v97_v63 = vsel %vm87_vm2, %v83_v57, 1326507024  ;;  %v92_v0 = vsel %vm84_vm3, %v71_v58, %v74_v59  ;;  %v88_v24 = vsel %vm84_vm3, %v68_v17, %v71_v58 }
  0x20   :  { %1347 = vmatpush3.bf16.msra.mxu0 %v1346_v25  ;;  %v94_v1 = vsel %vm86_vm4, %v77_v60, %v93_v61  ;;  %v96_v2 = vsel %vm84_vm3, %v74_v59, %v77_v60  ;;  %v98_v3 = vsel %vm86_vm4, %v80_v55, %v97_v63  ;;  %v89_v20 = vsel %vm87_vm2, %v77_v60, 2102212464 }
  0x21   :  { %v95_v5 = vsel %vm85_vm5, %v92_v0, %v94_v1  ;;  %v99_v6 = vsel %vm85_vm5, %v96_v2, %v98_v3  ;;  %v90_v25 = vsel %vm86_vm4, %v74_v59, %v89_v20  ;;  %v1372_v49 = vpack.c.bf16 %v606_v45, %v605_v43 }
  0x22   :  { %v1768_v12 = vmul.u32.u64.low %v100_v4, %v95_v5  ;;  %v1769_v13 = vmul.u32.u64.high %v100_v4, %v95_v5, %v1768_v12  ;;  %v1778_v18 = vmul.u32.u64.low %v100_v4, %v99_v6  ;;  %v1779_v19 = vmul.u32.u64.high %v100_v4, %v99_v6, %v1778_v18 }
  0x23   :  { %1252 = vmatmul.mubr.f32.vlgmr.msra.gmra.mrb[0].mxu0 %v48_v26  ;;  %v1360_v26 = vpack.c.bf16 %v600_v23, %v599_v22  ;;  %v91_v27 = vsel %vm85_vm5, %v88_v24, %v90_v25  ;;  %v1376_v54 = vpack.c.bf16 %v608_v52, %v607_v50 }
  0x24   :  { %v110_v30 = vadd.s32 1, %v1769_v13  ;;  %vm109_vm6 = vc.u32 %v1779_v19, %v1768_v12  ;;  %v107_v33 = vmul.u32 %v100_v4, %v91_v27  ;;  %v108_v63 = vadd.s32 %v1768_v12, %v1779_v19 }
  0x25   :  { %1361 = vmatprep.subr.bf16.mxu1 %v1360_v26  ;;  %v347_v27 = vshrl.u32 %v346_v41, 7 }
  0x26   :  { %v111_v35 = vsel %vm109_vm6, %v110_v30, %v1769_v13  ;;  %1363 = vmatpush3.bf16.msra.mxu1 %v1360_v26 }
  0x27   :  { %v112_v40 = vadd.s32 %v111_v35, %v107_v33  ;;  %1365 = vmatprep.subr.bf16.mxu1 %v1364_v34  ;;  %v1824_v32 = vsub.s32 0, %v347_v27 }
  0x29   :  { %v113_v47 = vadd.s32 536870912, %v112_v40 }
  0x2a   :  { %1367 = vmatpush3.bf16.msra.mxu1 %v1364_v34 }
  0x2b   :  { %1369 = vmatprep.subr.bf16.mxu1 %v1368_v42  ;;  %v114_v53 = vshrl.u32 %v113_v47, 30 }
  0x2d   :  { %v115_v55 = vshll.u32 %v114_v53, 30  ;;  %v138_v13 = vsub.s32 4, %v114_v53 }
  0x2e   :  { %1371 = vmatpush3.bf16.msra.mxu1 %v1368_v42 }
  0x2f   :  { %1373 = vmatprep.subr.bf16.mxu1 %v1372_v49  ;;  %v116_v56 = vsub.s32 %v112_v40, %v115_v55  ;;  %v139_v14 = vsel %vm54_vm8, %v138_v13, %v114_v53 }
  0x30   :  { %v141_v15 = vsel %vm53_vm9, 0, %v139_v14 }
  0x31   :  { %v118_v57 = vsub.s32 0, %v116_v56  ;;  %v248_v16 = vadd.s32 3, %v141_v15  ;;  %v145_v18 = vand.u32 3, %v141_v15 }
  0x32   :  { %1375 = vmatpush3.bf16.msra.mxu1 %v1372_v49 }
  0x33   :  { %1377 = vmatprep.subr.bf16.mxu1 %v1376_v54  ;;  %v1140_v58 = vmin.u32 %v118_v57, %v116_v56  ;;  %v249_v20 = vand.u32 3, %v248_v16  ;;  %vm147_vm10 = vcmp.eq.s32.totalorder %v145_v18, 0  ;;  %vm150_vm11 = vcmp.eq.s32.totalorder %v145_v18, 2 }
  0x34   :  { %vm146_vm14 = vcmp.lt.s32.totalorder %v145_v18, 2 }
  0x35   :  { %v120_v59 = vclz %v1140_v58  ;;  %vm251_vm12 = vcmp.eq.s32.totalorder %v249_v20, 0  ;;  %vm254_vm13 = vcmp.eq.s32.totalorder %v249_v20, 2  ;;  %vm250_vm15 = vcmp.lt.s32.totalorder %v249_v20, 2 }
  0x36   :  { %1379 = vmatpush3.bf16.msra.mxu1 %v1376_v54 }
  0x37   :  { %v1141_v60 = vadd.s32 4294967294, %v120_v59 }
  0x39   :  { %vm1142_vm7 = vcmp.lt.s32.totalorder %v1141_v60, 0 }
  0x3a   :  { %v123_v61 = vsel %vm1142_vm7, 0, %v1141_v60 }
  0x3b   :  { %v128_v62 = vsub.s32 4294967266, %v123_v61  ;;  %v124_v0 = vsub.s32 32, %v123_v61  ;;  %v125_v2 = vshll.u32 %v116_v56, %v123_v61  ;;  %v1147_v56 = vld [vmem:[%s2070_s8] ss:$0 sm:$0xff] }
  0x3d   :  { %v129_v1 = vadd.s32 127, %v128_v62  ;;  %v126_v3 = vshrl.u32 %v108_v63, %v124_v0  ;;  %v384_v63 = vld [vmem:[%s2068_s6] sm:$0x1] }
  0x3e   :  { %v1835_v0 = vmul.f32 %v384_v63, %v1729_v28 }
  0x3f   :  { %v130_v4 = vshll.u32 %v129_v1, 23  ;;  %v127_v5 = vor.u32 %v126_v3, %v125_v2 }
  0x40   :  { %v389_v1 = vand.u32 2139095040, %v1835_v0 }
  0x41   :  { %v131_v6 = vor.u32 4788187, %v130_v4  ;;  %v134_v8 = vcvt.s32.f32 %v127_v5 }
  0x42   :  { %v390_v2 = vshrl.u32 %v389_v1, 23 }
  0x43   :  { %v132_v7 = vand.u32 2147483647, %v131_v6 }
  0x44   :  { %v1148_v3 = vadd.s32 4294967169, %v390_v2  ;;  %v942_v2 = vld [vmem:[%s2066_s4 + $0x30] sm:$0xff] }
  0x45   :  { %v135_v9 = vmul.f32 %v134_v8, %v132_v7 }
  0x46   :  { %v396_v4 = vadd.s32 1, %v1148_v3  ;;  %v943_v3 = vld [vmem:[%s2066_s4 + $0x38] sm:$0xff] }
  0x47   :  { %v136_v10 = vxor.u32 2147483648, %v135_v9 }
  0x48   :  { %vm397_vm3 = vcmp.gt.s32.totalorder %v396_v4, 0 }
  0x49   :  { %v137_v11 = vsel %vm54_vm8, %v136_v10, %v135_v9  ;;  %v398_v5 = vsel %vm397_vm3, %v396_v4, 0  ;;  %v386_v10 = vand.u32 2147483647, %v1835_v0  ;;  %v1392_v4 = vpack.c.bf16 %v943_v3, %v942_v2 }
  0x4a   :  { %v140_v12 = vsel %vm53_vm9, %v1732_v29, %v137_v11  ;;  %v400_v6 = vand.u32 31, %v398_v5  ;;  %v399_v11 = vshrl.u32 %v398_v5, 5 }
  0x4b   :  { %1438 = vcosq.f32 %v140_v12 }
  0x4c   :  { %1440 = vsinq.f32 %v140_v12  ;;  %v401_v7 = vsub.s32 32, %v400_v6  ;;  %v412_v8 = vshll.u32 %v1581_v37, %v400_v6  ;;  %v415_v13 = vshll.u32 %v1582_v39, %v400_v6 }
  0x4d   :  { %v403_v14 = vshll.u32 %v1584_v46, %v400_v6  ;;  %v406_v15 = vshll.u32 %v1585_v48, %v400_v6  ;;  %v409_v18 = vshll.u32 %v1586_v51, %v400_v6  ;;  %vm421_vm4 = vcmp.lt.s32.totalorder %v399_v11, 4  ;;  %v944_v6 = vld [vmem:[%s2066_s4 + $0x40] sm:$0xff] }
  0x4e   :  { %v413_v9 = vshrl.u32 %v1582_v39, %v401_v7  ;;  %v416_v12 = vshrl.u32 %v1583_v44, %v401_v7  ;;  %v404_v16 = vshrl.u32 %v1585_v48, %v401_v7  ;;  %vm418_vm5 = vcmp.lt.s32.totalorder %v399_v11, 1 }
  0x4f   :  { %vm420_vm6 = vcmp.lt.s32.totalorder %v399_v11, 3  ;;  %vm419_vm7 = vcmp.lt.s32.totalorder %v399_v11, 2  ;;  %v946_v11 = vld [vmem:[%s2066_s4 + $0x50] sm:$0xff] }
  0x50   :  { %v414_v20 = vor.u32 %v413_v9, %v412_v8  ;;  %v405_v41 = vor.u32 %v404_v16, %v403_v14  ;;  %v949_v16 = vld [vmem:[%s2066_s4 + $0x68] sm:$0xff] }
  0x55   :  { %v1439_v17 = vpop.eup %1438 }
  0x56   :  { %v1441_v19 = vpop.eup %1440  ;;  %v151_v22 = vxor.u32 2147483648, %v1439_v17 }
  0x57   :  { %v148_v21 = vxor.u32 2147483648, %v1441_v19 }
  0x58   :  { %v152_v24 = vsel %vm150_vm11, %v151_v22, %v1441_v19  ;;  %v256_v26 = vsel %vm254_vm13, %v151_v22, %v1441_v19  ;;  %v410_v19 = vshrl.u32 %v1581_v37, %v401_v7  ;;  %v417_v22 = vor.u32 %v416_v12, %v415_v13  ;;  %v947_v13 = vld [vmem:[%s2066_s4 + $0x58] sm:$0xff] }
  0x59   :  { %v149_v23 = vsel %vm147_vm10, %v1439_v17, %v148_v21  ;;  %v253_v25 = vsel %vm251_vm12, %v1439_v17, %v148_v21  ;;  %v407_v17 = vshrl.u32 %v1586_v51, %v401_v7  ;;  %v393_v21 = vand.u32 8388607, %v386_v10 }
  0x5a   :  { %v153_v30 = vsel %vm146_vm14, %v149_v23, %v152_v24  ;;  %v257_v31 = vsel %vm250_vm15, %v253_v25, %v256_v26  ;;  %v411_v24 = vor.u32 %v410_v19, %v409_v18  ;;  %v427_v25 = vsel %vm421_vm4, %v414_v20, 920167782  ;;  %v950_v19 = vld [vmem:[%s2066_s4 + $0x70] sm:$0xff] }
  0x5b   :  { %v154_v33 = vsel %vm144_vm0, nan, %v153_v30  ;;  %v258_v34 = vsel %vm144_vm0, nan, %v257_v31  ;;  %v408_v23 = vor.u32 %v407_v17, %v406_v15  ;;  %v394_v26 = vor.u32 8388608, %v393_v21  ;;  %v948_v15 = vld [vmem:[%s2066_s4 + $0x60] sm:$0xff] }
  0x5c   :  { %v349_v35 = vrot.slane %v154_v33, %v1824_v32  ;;  %v356_v36 = vrot.slane %v258_v34, %v1824_v32  ;;  %v431_v27 = vsel %vm421_vm4, %v417_v22, 1326507024  ;;  %v428_v31 = vsel %vm420_vm6, %v411_v24, %v427_v25 }
  0x5d   :  { %v426_v30 = vsel %vm418_vm5, %v405_v41, %v408_v23  ;;  %v430_v33 = vsel %vm418_vm5, %v408_v23, %v411_v24  ;;  %v432_v34 = vsel %vm420_vm6, %v414_v20, %v431_v27  ;;  %v1400_v12 = vpack.c.bf16 %v947_v13, %v946_v11  ;;  %v951_v20 = vld [vmem:[%s2066_s4 + $0x78] sm:$0xff] }
  0x5e   :  { %v1404_v17 = vpack.c.bf16 %v949_v16, %v948_v15  ;;  %v1408_v21 = vpack.c.bf16 %v951_v20, %v950_v19  ;;  %vm388_vm10 = vcmp.lt.s32.totalorder %v1835_v0, 0  ;;  %vm387_vm11 = vcmp.le.f32.partialorder %v386_v10, 0.7853982 }
  0xf6   :  { %v341_v38 = vpop.f32.mrb[0].mxu0 }
  0xf7   :  { %v351_v40 = vmul.f32 %v349_v35, %v341_v38  ;;  %v358_v42 = vmul.f32 %v356_v36, %v341_v38  ;;  %v1253_v43 = vpop.f32.mrb[1].mxu0  ;;  %v434_v35 = vshll.u32 %v394_v26, 8  ;;  %v429_v36 = vsel %vm419_vm7, %v426_v30, %v428_v31 }
  0xf8   :  { %v433_v38 = vsel %vm419_vm7, %v430_v33, %v432_v34  ;;  %v402_v43 = vshrl.u32 %v1584_v46, %v401_v7  ;;  %v945_v7 = vld [vmem:[%s2066_s4 + $0x48] sm:$0xff] }
  0xf9   :  { %v360_v45 = vmul.f32 %v351_v40, %v351_v40  ;;  %v361_v47 = vmul.f32 %v358_v42, %v358_v42  ;;  %359 = vst [vmem:[#allocation7] sm:$0xff] %v351_v40  ;;  %v1396_v8 = vpack.c.bf16 %v945_v7, %v944_v6 }
  0xfb   :  { %v362_v49 = vadd.f32 %v361_v47, %v360_v45  ;;  %v1864_v45 = vmul.u32.u64.low %v434_v35, %v433_v38  ;;  %v1865_v47 = vmul.u32.u64.high %v434_v35, %v433_v38, %v1864_v45 }
  0xfd   :  { %1442 = vrsqrt.f32 %v362_v49  ;;  %vm365_vm1 = vcmp.eq.f32.partialorder %v362_v49, inf  ;;  %v368_v52 = vand.u32 2147483648, %v362_v49  ;;  %vm367_vm2 = vcmp.eq.f32.partialorder %v362_v49, 0.0 }
 0x107   :  { %v1443_v29 = vpop.eup %1442 }
 0x108   :  { %v364_v50 = vmul.f32 %v1443_v29, %v362_v49  ;;  %v937_v29 = vld [vmem:[%s2066_s4 + $0x8] sm:$0xff] }
 0x10a   :  { %v366_v53 = vsel %vm365_vm1, %v362_v49, %v364_v50  ;;  %v936_v49 = vld [vmem:[%s2066_s4] sm:$0xff]  ;;  %v423_v50 = vsel %vm421_vm4, %v411_v24, 2102212464 }
 0x10b   :  { %v369_v54 = vsel %vm367_vm2, %v368_v52, %v366_v53  ;;  %v1380_v52 = vpack.c.bf16 %v937_v29, %v936_v49  ;;  %v422_v53 = vsel %vm418_vm5, %v402_v43, %v405_v41  ;;  %vm478_vm2 = vweird.f32 %v1835_v0 }
 0x10c   :  { %v379_v55 = vadd.f32 1e-05, %v369_v54  ;;  %v377_v57 = vadd.f32 %v1147_v56, %v369_v54  ;;  %v424_v54 = vsel %vm420_vm6, %v408_v23, %v423_v50  ;;  %v939_v56 = vld [vmem:[%s2066_s4 + $0x18] sm:$0xff] }
 0x10d   :  { %1381 = vmatprep.subr.bf16.mxu0 %v1380_v52 }
 0x10e   :  { %1444 = vrcp.f32 %v379_v55  ;;  %v378_v58 = vmax.f32 %v377_v57, 0.0  ;;  %1383 = vmatpush3.bf16.msra.mxu0 %v1380_v52  ;;  %v938_v55 = vld [vmem:[%s2066_s4 + $0x10] sm:$0xff] }
 0x10f   :  { %v1384_v57 = vpack.c.bf16 %v939_v56, %v938_v55 }
 0x111   :  { %1385 = vmatprep.subr.bf16.mxu0 %v1384_v57 }
 0x112   :  { %1387 = vmatpush3.bf16.msra.mxu0 %v1384_v57 }
 0x118   :  { %v1445_v59 = vpop.eup %1444 }
 0x119   :  { %v381_v60 = vmul.f32 %v1445_v59, %v378_v58  ;;  %v425_v58 = vsel %vm419_vm7, %v422_v53, %v424_v54 }
 0x11a   :  { %v441_v63 = vmul.u32 %v434_v35, %v425_v58 }
 0x11b   :  { %v382_v61 = vmul.f32 %v381_v60, %v351_v40  ;;  %v383_v62 = vmul.f32 %v381_v60, %v358_v42  ;;  %v1859_v40 = vmul.u32.u64.low %v434_v35, %v429_v36  ;;  %v1860_v42 = vmul.u32.u64.high %v434_v35, %v429_v36, %v1859_v40  ;;  %v940_v60 = vld [vmem:[%s2066_s4 + $0x20] sm:$0xff] }
 0x11d   :  { %1286 = vmatprep.mubr.f32.mxu1 %v382_v61  ;;  %v444_v59 = vadd.s32 1, %v1860_v42  ;;  %vm443_vm8 = vc.u32 %v1865_v47, %v1859_v40  ;;  %v941_v61 = vld [vmem:[%s2066_s4 + $0x28] sm:$0xff]  ;;  %v442_v30 = vadd.s32 %v1859_v40, %v1865_v47 }
 0x11e   :  { %1287 = vmatmul.mubr.f32.vlgmr.msra.gmra.mrb[0].mxu1 %v383_v62  ;;  %v1388_v62 = vpack.c.bf16 %v941_v61, %v940_v60 }
 0x11f   :  { %v445_v1 = vsel %vm443_vm8, %v444_v59, %v1860_v42 }
 0x120   :  { %1389 = vmatprep.subr.bf16.mxu0 %v1388_v62  ;;  %v446_v5 = vadd.s32 %v445_v1, %v441_v63 }
 0x121   :  { %1391 = vmatpush3.bf16.msra.mxu0 %v1388_v62 }
 0x122   :  { %1393 = vmatprep.subr.bf16.mxu0 %v1392_v4  ;;  %v447_v9 = vadd.s32 536870912, %v446_v5 }
 0x124   :  { %v448_v14 = vshrl.u32 %v447_v9, 30 }
 0x125   :  { %1395 = vmatpush3.bf16.msra.mxu0 %v1392_v4 }
 0x126   :  { %1397 = vmatprep.subr.bf16.mxu0 %v1396_v8  ;;  %v449_v18 = vshll.u32 %v448_v14, 30  ;;  %v472_v52 = vsub.s32 4, %v448_v14 }
 0x128   :  { %v450_v22 = vsub.s32 %v446_v5, %v449_v18  ;;  %v473_v47 = vsel %vm388_vm10, %v472_v52, %v448_v14 }
 0x129   :  { %1399 = vmatpush3.bf16.msra.mxu0 %v1396_v8  ;;  %v475_v53 = vsel %vm387_vm11, 0, %v473_v47 }
 0x12a   :  { %1401 = vmatprep.subr.bf16.mxu0 %v1400_v12  ;;  %v452_v41 = vsub.s32 0, %v450_v22  ;;  %v582_v54 = vadd.s32 3, %v475_v53  ;;  %v479_v57 = vand.u32 3, %v475_v53 }
 0x12c   :  { %v1149_v23 = vmin.u32 %v452_v41, %v450_v22  ;;  %v583_v58 = vand.u32 3, %v582_v54  ;;  %vm481_vm12 = vcmp.eq.s32.totalorder %v479_v57, 0  ;;  %vm484_vm13 = vcmp.eq.s32.totalorder %v479_v57, 2 }
 0x12d   :  { %1403 = vmatpush3.bf16.msra.mxu0 %v1400_v12  ;;  %vm480_vm0 = vcmp.lt.s32.totalorder %v479_v57, 2 }
 0x12e   :  { %1405 = vmatprep.subr.bf16.mxu0 %v1404_v17  ;;  %v454_v24 = vclz %v1149_v23  ;;  %vm585_vm14 = vcmp.eq.s32.totalorder %v583_v58, 0  ;;  %vm588_vm15 = vcmp.eq.s32.totalorder %v583_v58, 2  ;;  %vm584_vm1 = vcmp.lt.s32.totalorder %v583_v58, 2  ;;  %v1156_v23 = vld [vmem:[%s2071_s9] ss:$0 sm:$0xff] }
 0x130   :  { %v1150_v25 = vadd.s32 4294967294, %v454_v24 }
 0x131   :  { %1407 = vmatpush3.bf16.msra.mxu0 %v1404_v17 }
 0x132   :  { %1409 = vmatprep.subr.bf16.mxu0 %v1408_v21  ;;  %vm1151_vm9 = vcmp.lt.s32.totalorder %v1150_v25, 0 }
 0x133   :  { %v457_v26 = vsel %vm1151_vm9, 0, %v1150_v25 }
 0x134   :  { %v462_v27 = vsub.s32 4294967266, %v457_v26  ;;  %v458_v31 = vsub.s32 32, %v457_v26  ;;  %v459_v34 = vshll.u32 %v450_v22, %v457_v26 }
 0x135   :  { %1411 = vmatpush3.bf16.msra.mxu0 %v1408_v21 }
 0x136   :  { %v463_v33 = vadd.s32 127, %v462_v27  ;;  %v460_v35 = vshrl.u32 %v442_v30, %v458_v31 }
 0x138   :  { %v464_v36 = vshll.u32 %v463_v33, 23  ;;  %v461_v38 = vor.u32 %v460_v35, %v459_v34  ;;  %v727_v33 = vld [vmem:[%s2069_s7] sm:$0x1]  ;;  %s1587_s7 = smov [#allocation8]  }
 0x139   :  { %v1939_v34 = vmul.f32 %v727_v33, %v1729_v28  ;;  %s1107_s9 = sshll.u32 %s1587_s7, 4  ;;  %s1108_s9 = int_to_ptr.vmem [resolvable:$true] %s1107_s9 }
 0x13a   :  { %v465_v42 = vor.u32 4788187, %v464_v36  ;;  %v468_v45 = vcvt.s32.f32 %v461_v38  ;;  %s1462_s30 = scalar_lea.vmem %s1108_s9, 128  ;;  %p1467_p1 = scmp.lt.s32.totalorder %s1108_s9, %s1108_s9 }
 0x13b   :  { %v732_v35 = vand.u32 2139095040, %v1939_v34  ;;  %v729_v52 = vand.u32 2147483647, %v1939_v34  ;;  %p1463_p0 = scmp.ne.s32.totalorder %s1108_s9, %s1462_s30  ;;  %p1468_p2 = scmp.lt.s32.totalorder %s1462_s30, %s1462_s30 }
 0x13c   :  { %v466_v43 = vand.u32 2147483647, %v465_v42 }
 0x13d   :  { %v733_v36 = vshrl.u32 %v732_v35, 23  ;;  %p1469_p3 = por %p1468_p2, %p1467_p1 }
 0x13e   :  { %v469_v49 = vmul.f32 %v468_v45, %v466_v43 }
 0x13f   :  { %v1157_v38 = vadd.s32 4294967169, %v733_v36  ;;  %p1470_p4 = pnand %p1469_p3, %p1463_p0 }
 0x140   :  { %v470_v29 = vxor.u32 2147483648, %v469_v49 }
 0x141   :  { %v739_v42 = vadd.s32 1, %v1157_v38 }
 0x142   :  { %v471_v50 = vsel %vm388_vm10, %v470_v29, %v469_v49 }
 0x143   :  { %v474_v40 = vsel %vm387_vm11, %v1835_v0, %v471_v50  ;;  %vm740_vm5 = vcmp.gt.s32.totalorder %v739_v42, 0 }
 0x144   :  { %1446 = vcosq.f32 %v474_v40  ;;  %v741_v43 = vsel %vm740_vm5, %v739_v42, 0 }
 0x145   :  { %1448 = vsinq.f32 %v474_v40  ;;  %v743_v45 = vand.u32 31, %v741_v43  ;;  %v742_v40 = vshrl.u32 %v741_v43, 5 }
 0x147   :  { %v744_v49 = vsub.s32 32, %v743_v45  ;;  %v755_v29 = vshll.u32 %v1581_v37, %v743_v45  ;;  %v758_v47 = vshll.u32 %v1582_v39, %v743_v45  ;;  %v746_v53 = vshll.u32 %v1584_v46, %v743_v45 }
 0x148   :  { %v749_v54 = vshll.u32 %v1585_v48, %v743_v45  ;;  %v752_v57 = vshll.u32 %v1586_v51, %v743_v45  ;;  %vm764_vm6 = vcmp.lt.s32.totalorder %v742_v40, 4  ;;  %vm761_vm7 = vcmp.lt.s32.totalorder %v742_v40, 1 }
 0x149   :  { %v756_v50 = vshrl.u32 %v1582_v39, %v744_v49  ;;  %v759_v28 = vshrl.u32 %v1583_v44, %v744_v49  ;;  %v753_v58 = vshrl.u32 %v1581_v37, %v744_v49  ;;  %vm763_vm8 = vcmp.lt.s32.totalorder %v742_v40, 3 }
 0x14a   :  { %vm762_vm9 = vcmp.lt.s32.totalorder %v742_v40, 2 }
 0x14e   :  { %v1447_v55 = vpop.eup %1446 }
 0x14f   :  { %v1449_v56 = vpop.eup %1448  ;;  %v485_v60 = vxor.u32 2147483648, %v1447_v55 }
 0x150   :  { %v482_v59 = vxor.u32 2147483648, %v1449_v56 }
 0x151   :  { %v486_v61 = vsel %vm484_vm13, %v485_v60, %v1449_v56  ;;  %v590_v63 = vsel %vm588_vm15, %v485_v60, %v1449_v56  ;;  %v750_v56 = vshrl.u32 %v1586_v51, %v744_v49  ;;  %v736_v60 = vand.u32 8388607, %v729_v52 }
 0x152   :  { %v483_v10 = vsel %vm481_vm12, %v1447_v55, %v482_v59  ;;  %v587_v62 = vsel %vm585_vm14, %v1447_v55, %v482_v59  ;;  %v747_v55 = vshrl.u32 %v1585_v48, %v744_v49  ;;  %v757_v59 = vor.u32 %v756_v50, %v755_v29 }
 0x153   :  { %v487_v1 = vsel %vm480_vm0, %v483_v10, %v486_v61  ;;  %v591_v2 = vsel %vm584_vm1, %v587_v62, %v590_v63  ;;  %v760_v10 = vor.u32 %v759_v28, %v758_v47  ;;  %v751_v44 = vor.u32 %v750_v56, %v749_v54 }
 0x154   :  { %v488_v3 = vsel %vm478_vm2, nan, %v487_v1  ;;  %v592_v4 = vsel %vm478_vm2, nan, %v591_v2  ;;  %v748_v39 = vor.u32 %v747_v55, %v746_v53  ;;  %v754_v61 = vor.u32 %v753_v58, %v752_v57 }
 0x155   :  { %v688_v5 = vrot.slane %v488_v3, %v1824_v32  ;;  %v695_v6 = vrot.slane %v592_v4, %v1824_v32  ;;  %v770_v62 = vsel %vm764_vm6, %v757_v59, 920167782  ;;  %v737_v48 = vor.u32 8388608, %v736_v60 }
 0x156   :  { %v774_v63 = vsel %vm764_vm6, %v760_v10, 1326507024  ;;  %v769_v51 = vsel %vm761_vm7, %v748_v39, %v751_v44  ;;  %v771_v37 = vsel %vm763_vm8, %v754_v61, %v770_v62  ;;  %v773_v1 = vsel %vm761_vm7, %v751_v44, %v754_v61 }
 0x157   :  { %v775_v2 = vsel %vm763_vm8, %v757_v59, %v774_v63  ;;  %v777_v3 = vshll.u32 %v737_v48, 8  ;;  %v772_v4 = vsel %vm762_vm9, %v769_v51, %v771_v37 }
 0x1f1   :  { %v1288_v7 = vpop.f32.mrb[0].mxu1 }
 0x1f2   :  { %v697_v8 = vmul.f32 %v1288_v7, %v695_v6  ;;  %v700_v9 = vmul.f32 %v1288_v7, %v688_v5  ;;  %v675_v11 = vpop.f32.mrb[1].mxu1 }
 0x1f3   :  { %v690_v13 = vmul.f32 %v688_v5, %v675_v11  ;;  %v699_v12 = vmul.f32 %v695_v6, %v675_v11  ;;  %v776_v5 = vsel %vm762_vm9, %v773_v1, %v775_v2 }
 0x1f4   :  { %v1963_v6 = vmul.u32.u64.low %v777_v3, %v772_v4  ;;  %v1964_v7 = vmul.u32.u64.high %v777_v3, %v772_v4, %v1963_v6 }
 0x1f5   :  { %v698_v14 = vsub.f32 %v690_v13, %v697_v8  ;;  %v701_v15 = vadd.f32 %v700_v9, %v699_v12  ;;  %v745_v8 = vshrl.u32 %v1584_v46, %v744_v49  ;;  %v766_v13 = vsel %vm764_vm6, %v754_v61, 2102212464 }
 0x1f6   :  { %v1967_v9 = vmul.u32.u64.low %v777_v3, %v776_v5  ;;  %v1968_v11 = vmul.u32.u64.high %v777_v3, %v776_v5, %v1967_v9 }
 0x1f7   :  { %v703_v16 = vmul.f32 %v698_v14, %v698_v14  ;;  %v704_v17 = vmul.f32 %v701_v15, %v701_v15  ;;  %702 = vst [vmem:[#allocation8] sm:$0xff] %v698_v14  ;;  %v765_v12 = vsel %vm761_vm7, %v745_v8, %v748_v39 }
 0x1f8   :  { %vm786_vm10 = vc.u32 %v1968_v11, %v1963_v6 }
 0x1f9   :  { %v705_v0 = vadd.f32 %v704_v17, %v703_v16  ;;  %v787_v16 = vadd.s32 1, %v1964_v7 }
 0x1fb   :  { %1450 = vrsqrt.f32 %v705_v0  ;;  %vm708_vm3 = vcmp.eq.f32.partialorder %v705_v0, inf  ;;  %v711_v20 = vand.u32 2147483648, %v705_v0  ;;  %vm710_vm4 = vcmp.eq.f32.partialorder %v705_v0, 0.0 }
 0x205   :  { %v1451_v18 = vpop.eup %1450 }
 0x206   :  { %v707_v19 = vmul.f32 %v1451_v18, %v705_v0 }
 0x208   :  { %v709_v21 = vsel %vm708_vm3, %v705_v0, %v707_v19  ;;  %v788_v0 = vsel %vm786_vm10, %v787_v16, %v1964_v7 }
 0x209   :  { %v712_v22 = vsel %vm710_vm4, %v711_v20, %v709_v21 }
 0x20a   :  { %v722_v41 = vadd.f32 1e-05, %v712_v22  ;;  %v720_v24 = vadd.f32 %v1156_v23, %v712_v22 }
 0x20c   :  { %1452 = vrcp.f32 %v722_v41  ;;  %v721_v25 = vmax.f32 %v720_v24, 0.0 }
 0x216   :  { %v1453_v26 = vpop.eup %1452 }
 0x217   :  { %v724_v27 = vmul.f32 %v1453_v26, %v721_v25 }
 0x219   :  { %v726_v30 = vmul.f32 %v724_v27, %v701_v15  ;;  %v725_v31 = vmul.f32 %v724_v27, %v698_v14  ;;  %v767_v14 = vsel %vm763_vm8, %v751_v44, %v766_v13 }
 0x21a   :  { %v768_v15 = vsel %vm762_vm9, %v765_v12, %v767_v14 }
 0x21b   :  { %1321 = vmatprep.mubr.f32.mxu0 %v725_v31  ;;  %v784_v17 = vmul.u32 %v777_v3, %v768_v15 }
 0x21c   :  { %1322 = vmatmul.mubr.f32.vlgmr.msra.gmra.mrb[2].mxu0 %v726_v30 }
 0x21d   :  { %v789_v18 = vadd.s32 %v788_v0, %v784_v17 }
 0x21f   :  { %v790_v46 = vadd.s32 536870912, %v789_v18 }
 0x221   :  { %v791_v19 = vshrl.u32 %v790_v46, 30 }
 0x223   :  { %v792_v20 = vshll.u32 %v791_v19, 30 }
 0x225   :  { %v793_v21 = vsub.s32 %v789_v18, %v792_v20 }
 0x227   :  { %v795_v22 = vsub.s32 0, %v793_v21 }
 0x228   :  { %1473 = shalt.err (!%p1470_p4)
}
 0x229   :  { %s1474_s18 = scalar_lea.hbm %s2076_s14, 128 }
 0x22a   :  { %p1475_p5 = scmp.ne.s32.totalorder %s2076_s14, %s1474_s18  ;;  %p1478_p6 = scmp.lt.u32.totalorder %s1474_s18, %s2076_s14 }
 0x22c   :  { %p1480_p7 = pnand %p1478_p6, %p1475_p5 }
 0x22e   :  { %1483 = shalt.err (!%p1480_p7)
}
 0x22f   :  { %1110 = dma.vmem_to_hbm [thread:$0]  %s1108_s9, 128, %s2076_s14, [#allocation9]   ;;  %v1158_v41 = vmin.u32 %v795_v22, %v793_v21  ;;  %v785_v27 = vadd.s32 %v1963_v6, %v1968_v11  ;;  %vm731_vm12 = vcmp.lt.s32.totalorder %v1939_v34, 0  ;;  %vm730_vm13 = vcmp.le.f32.partialorder %v729_v52, 0.7853982 }
 0x230   :  { %v815_v40 = vsub.s32 4, %v791_v19  ;;  %vm821_vm4 = vweird.f32 %v1939_v34  ;;  %s1588_s14 = smov [#allocation10]  }
 0x231   :  { %v797_v23 = vclz %v1158_v41  ;;  %s1117_s8 = sshll.u32 %s1588_s14, 4  ;;  %s1118_s8 = int_to_ptr.vmem [resolvable:$true] %s1117_s8 }
 0x232   :  { %v816_v28 = vsel %vm731_vm12, %v815_v40, %v791_v19  ;;  %s1484_s23 = scalar_lea.vmem %s1118_s8, 128  ;;  %p1489_p9 = scmp.lt.s32.totalorder %s1118_s8, %s1118_s8 }
 0x233   :  { %v1159_v24 = vadd.s32 4294967294, %v797_v23  ;;  %v818_v53 = vsel %vm730_vm13, 0, %v816_v28  ;;  %p1485_p8 = scmp.ne.s32.totalorder %s1118_s8, %s1484_s23  ;;  %p1490_p10 = scmp.lt.s32.totalorder %s1484_s23, %s1484_s23 }
 0x234   :  { %v925_v54 = vadd.s32 3, %v818_v53  ;;  %v822_v57 = vand.u32 3, %v818_v53 }
 0x235   :  { %vm1160_vm11 = vcmp.lt.s32.totalorder %v1159_v24, 0  ;;  %p1491_p11 = por %p1490_p10, %p1489_p9 }
 0x236   :  { %v800_v25 = vsel %vm1160_vm11, 0, %v1159_v24  ;;  %v926_v58 = vand.u32 3, %v925_v54  ;;  %vm824_vm14 = vcmp.eq.s32.totalorder %v822_v57, 0  ;;  %vm827_vm15 = vcmp.eq.s32.totalorder %v822_v57, 2 }
 0x237   :  { %v805_v26 = vsub.s32 4294967266, %v800_v25  ;;  %v801_v30 = vsub.s32 32, %v800_v25  ;;  %v802_v33 = vshll.u32 %v793_v21, %v800_v25  ;;  %vm823_vm2 = vcmp.lt.s32.totalorder %v822_v57, 2  ;;  %p1492_p12 = pnand %p1491_p11, %p1485_p8 }
 0x238   :  { %vm928_vm0 = vcmp.eq.s32.totalorder %v926_v58, 0  ;;  %vm931_vm1 = vcmp.eq.s32.totalorder %v926_v58, 2  ;;  %vm927_vm3 = vcmp.lt.s32.totalorder %v926_v58, 2 }
 0x239   :  { %v806_v31 = vadd.s32 127, %v805_v26  ;;  %v803_v35 = vshrl.u32 %v785_v27, %v801_v30 }
 0x23b   :  { %v807_v36 = vshll.u32 %v806_v31, 23  ;;  %v804_v38 = vor.u32 %v803_v35, %v802_v33 }
 0x23d   :  { %v808_v42 = vor.u32 4788187, %v807_v36  ;;  %v811_v45 = vcvt.s32.f32 %v804_v38 }
 0x23f   :  { %v809_v43 = vand.u32 2147483647, %v808_v42 }
 0x241   :  { %v812_v49 = vmul.f32 %v811_v45, %v809_v43 }
 0x243   :  { %v813_v29 = vxor.u32 2147483648, %v812_v49 }
 0x245   :  { %v814_v50 = vsel %vm731_vm12, %v813_v29, %v812_v49 }
 0x246   :  { %v817_v47 = vsel %vm730_vm13, %v1939_v34, %v814_v50 }
 0x247   :  { %1454 = vcosq.f32 %v817_v47 }
 0x248   :  { %1456 = vsinq.f32 %v817_v47 }
 0x251   :  { %v1455_v55 = vpop.eup %1454 }
 0x252   :  { %v1457_v56 = vpop.eup %1456  ;;  %v828_v60 = vxor.u32 2147483648, %v1455_v55 }
 0x253   :  { %v825_v59 = vxor.u32 2147483648, %v1457_v56 }
 0x254   :  { %v829_v10 = vsel %vm827_vm15, %v828_v60, %v1457_v56  ;;  %v933_v44 = vsel %vm931_vm1, %v828_v60, %v1457_v56 }
 0x255   :  { %v826_v52 = vsel %vm824_vm14, %v1455_v55, %v825_v59  ;;  %v930_v39 = vsel %vm928_vm0, %v1455_v55, %v825_v59 }
 0x256   :  { %v830_v61 = vsel %vm823_vm2, %v826_v52, %v829_v10  ;;  %v934_v62 = vsel %vm927_vm3, %v930_v39, %v933_v44 }
 0x257   :  { %v831_v48 = vsel %vm821_vm4, nan, %v830_v61  ;;  %v935_v63 = vsel %vm821_vm4, nan, %v934_v62 }
 0x258   :  { %v1031_v51 = vrot.slane %v831_v48, %v1824_v32  ;;  %v1038_v37 = vrot.slane %v935_v63, %v1824_v32 }
 0x2ef   :  { %v1323_v1 = vpop.f32.mrb[2].mxu0 }
 0x2f0   :  { %v1040_v2 = vmul.f32 %v1323_v1, %v1038_v37  ;;  %v1043_v3 = vmul.f32 %v1323_v1, %v1031_v51  ;;  %v1018_v4 = vpop.f32.mrb[3].mxu0 }
 0x2f1   :  { %v1033_v5 = vmul.f32 %v1031_v51, %v1018_v4  ;;  %v1042_v6 = vmul.f32 %v1038_v37, %v1018_v4 }
 0x2f3   :  { %v1041_v7 = vsub.f32 %v1033_v5, %v1040_v2  ;;  %v1044_v8 = vadd.f32 %v1043_v3, %v1042_v6 }
 0x2f5   :  { %v1046_v34 = vmul.f32 %v1041_v7, %v1041_v7  ;;  %v1047_v9 = vmul.f32 %v1044_v8, %v1044_v8  ;;  %1045 = vst [vmem:[#allocation10] sm:$0xff] %v1041_v7 }
 0x2f6   :  { %1495 = shalt.err (!%p1492_p12)
}
 0x2f7   :  { %s1496_s0 = scalar_lea.hbm %s2077_s15, 128 }
 0x2f8   :  { %p1497_p13 = scmp.ne.s32.totalorder %s2077_s15, %s1496_s0  ;;  %p1500_p0 = scmp.lt.u32.totalorder %s1496_s0, %s2077_s15 }
 0x2fa   :  { %p1502_p1 = pnand %p1500_p0, %p1497_p13 }
 0x2fc   :  { %1505 = shalt.err (!%p1502_p1)
}
 0x2fd   :  { %1120 = dma.vmem_to_hbm [thread:$0]  %s1118_s8, 128, %s2077_s15, [#allocation9]   ;;  %v1048_v32 = vadd.f32 %v1047_v9, %v1046_v34  ;;  %v1165_v17 = vld [vmem:[%s2072_s10] ss:$0 sm:$0xff] }
 0x2fe   :  { %s1589_s7 = smov [#allocation5]   ;;  %s1590_s15 = smov [#allocation3]  }
 0x2ff   :  { %1458 = vrsqrt.f32 %v1048_v32  ;;  %vm1051_vm5 = vcmp.eq.f32.partialorder %v1048_v32, inf  ;;  %v1054_v12 = vand.u32 2147483648, %v1048_v32  ;;  %vm1053_vm6 = vcmp.eq.f32.partialorder %v1048_v32, 0.0  ;;  %s1087_s9 = sshll.u32 %s1589_s7, 4  ;;  %s1077_s30 = sshll.u32 %s1590_s15, 4  ;;  %s1088_s9 = int_to_ptr.vmem [resolvable:$true] %s1087_s9  ;;  %s2012_s30 = int_to_ptr.vmem [resolvable:$true] %s1077_s30 }
 0x300   :  { %s1591_s16 = smov [#allocation7]   ;;  %s1506_s18 = scalar_lea.vmem %s1088_s9, 128 }
 0x301   :  { %s1097_s17 = sshll.u32 %s1591_s16, 4  ;;  %p1507_p2 = scmp.ne.s32.totalorder %s1088_s9, %s1506_s18  ;;  %s2014_s17 = int_to_ptr.vmem [resolvable:$true] %s1097_s17 }
 0x302   :  { %p1511_p3 = scmp.lt.s32.totalorder %s1088_s9, %s1088_s9  ;;  %p1512_p4 = scmp.lt.s32.totalorder %s1506_s18, %s1506_s18 }
 0x304   :  { %p1513_p5 = por %p1512_p4, %p1511_p3 }
 0x306   :  { %p1514_p6 = pnand %p1513_p5, %p1507_p2 }
 0x309   :  { %v1459_v11 = vpop.eup %1458 }
 0x30a   :  { %v1050_v13 = vmul.f32 %v1459_v11, %v1048_v32 }
 0x30c   :  { %v1052_v14 = vsel %vm1051_vm5, %v1048_v32, %v1050_v13 }
 0x30d   :  { %v1055_v15 = vsel %vm1053_vm6, %v1054_v12, %v1052_v14 }
 0x30e   :  { %v1064_v16 = vadd.f32 1e-05, %v1055_v15  ;;  %v1063_v0 = vadd.f32 %v1165_v17, %v1055_v15 }
 0x310   :  { %1460 = vrcp.f32 %v1064_v16 }
 0x31a   :  { %v1461_v18 = vpop.eup %1460 }
 0x31b   :  { %v1066_v46 = vmul.f32 %v1461_v18, %v1063_v0 }
 0x31d   :  { %v1069_v19 = vmul.f32 %v1066_v46, %v1044_v8  ;;  %v1067_v20 = vmul.f32 %v1066_v46, %v1041_v7 }
 0x31f   :  { %1070 = vst [vmem:[#allocation5] sm:$0xff] %v1069_v19  ;;  %1068 = vst [vmem:[#allocation3] sm:$0xff] %v1067_v20 }
 0x320   :  { %1517 = shalt.err (!%p1514_p6)
}
 0x321   :  { %s1518_s3 = scalar_lea.hbm %s2074_s12, 128 }
 0x322   :  { %p1519_p7 = scmp.ne.s32.totalorder %s2074_s12, %s1518_s3  ;;  %p1522_p8 = scmp.lt.u32.totalorder %s1518_s3, %s2074_s12 }
 0x324   :  { %p1524_p9 = pnand %p1522_p8, %p1519_p7 }
 0x326   :  { %1527 = shalt.err (!%p1524_p9)
}
 0x327   :  { %1090 = dma.vmem_to_hbm [thread:$0]  %s1088_s9, 128, %s2074_s12, [#allocation6]  }
 0x328   :  { %s1528_s23 = scalar_lea.vmem %s2012_s30, 128  ;;  %p1533_p11 = scmp.lt.s32.totalorder %s2012_s30, %s2012_s30 }
 0x329   :  { %p1529_p10 = scmp.ne.s32.totalorder %s2012_s30, %s1528_s23  ;;  %p1534_p12 = scmp.lt.s32.totalorder %s1528_s23, %s1528_s23 }
 0x32b   :  { %p1535_p13 = por %p1534_p12, %p1533_p11 }
 0x32d   :  { %p1536_p0 = pnand %p1535_p13, %p1529_p10 }
 0x32f   :  { %1539 = shalt.err (!%p1536_p0)
}
 0x330   :  { %s1540_s0 = scalar_lea.hbm %s2073_s11, 128 }
 0x331   :  { %p1541_p1 = scmp.ne.s32.totalorder %s2073_s11, %s1540_s0  ;;  %p1544_p2 = scmp.lt.u32.totalorder %s1540_s0, %s2073_s11 }
 0x333   :  { %p1546_p3 = pnand %p1544_p2, %p1541_p1 }
 0x335   :  { %1549 = shalt.err (!%p1546_p3)
}
 0x336   :  { %1080 = dma.vmem_to_hbm [thread:$0]  %s2012_s30, 128, %s2073_s11, [#allocation4]  }
 0x337   :  { %s1550_s27 = scalar_lea.vmem %s2014_s17, 128  ;;  %p1555_p5 = scmp.lt.s32.totalorder %s2014_s17, %s2014_s17 }
 0x338   :  { %p1551_p4 = scmp.ne.s32.totalorder %s2014_s17, %s1550_s27  ;;  %p1556_p6 = scmp.lt.s32.totalorder %s1550_s27, %s1550_s27 }
 0x33a   :  { %p1557_p7 = por %p1556_p6, %p1555_p5 }
 0x33c   :  { %p1558_p8 = pnand %p1557_p7, %p1551_p4 }
 0x33e   :  { %1561 = shalt.err (!%p1558_p8)
}
 0x33f   :  { %s1562_s7 = scalar_lea.hbm %s2075_s13, 128 }
 0x340   :  { %p1563_p9 = scmp.ne.s32.totalorder %s2075_s13, %s1562_s7  ;;  %p1566_p10 = scmp.lt.u32.totalorder %s1562_s7, %s2075_s13 }
 0x342   :  { %p1568_p11 = pnand %p1566_p10, %p1563_p9 }
 0x344   :  { %1571 = shalt.err (!%p1568_p11)
}
 0x345   :  { %1100 = dma.vmem_to_hbm [thread:$0]  %s2014_s17, 128, %s2075_s13, [#allocation6]  }
 0x346   :  { %1572 = dma.done.wait [#allocation4], 128  }
 0x347   :  { %1573 = vsyncadd [#allocation4], 4294967168 }
 0x348   :  { %1574 = dma.done.wait [#allocation6], 256  }
 0x349   :  { %1575 = vsyncadd [#allocation6], 4294967040 }
 0x34a   :  { %1576 = dma.done.wait [#allocation9], 256  }
 0x34b   :  { %1577 = vsyncadd [#allocation9], 4294967040 }
 0x34c   :  { %1136 = vsyncpa [#allocation4], 1 }
 0x34d   :  { %1137 = vsyncpa [#allocation6], 1 }
 0x34e   :  { %1138 = vsyncpa [#allocation9], 1 }

</bundles_post_ra>
